<compile_context>
chip_gen: v6e
topology: v6e:2x2x1
jax: 0.10.0
libtpu: 0.0.40
codegen_flags: <defaults>
</compile_context>

<pallas_src>
import functools

import jax
import jax.numpy as jnp
import numpy as np
from jax.experimental import pallas as pl
from jax.experimental.pallas import tpu as pltpu

NEG_SLOPE = 0.2          # LeakyReLU negative slope (module default)
MASK_VAL = -2.0e30       # logit assigned to non-edges
INIT_M = -1.0e30         # running-max init; MASK_VAL - INIT_M = -1e30 -> exp==0


def _round_up(x, m):
    return ((x + m - 1) // m) * m


def _pick_tile(n, max_tile, multiple):
    """Largest multiple of `multiple` dividing n and <= max_tile (else n)."""
    t = min(n, max_tile)
    t = (t // multiple) * multiple
    while t >= multiple:
        if n % t == 0:
            return t
        t -= multiple
    return n


def _tpu_config():
    """Generation-aware (vmem_limit_bytes, default dst tile, default src tile,
    bf16-elementwise-ok)."""
    kind = ""
    try:
        kind = jax.devices()[0].device_kind.lower()
    except Exception:  # pragma: no cover - defensive
        pass
    vmem_bytes = None
    try:
        vmem_bytes = int(pltpu.get_tpu_info().vmem_capacity_bytes)
    except Exception:  # pragma: no cover - defensive
        vmem_bytes = None
    if vmem_bytes is None:
        vmem_bytes = (64 if ("v7" in kind or "7x" in kind) else 128) * 1024 * 1024
    small_vmem = vmem_bytes <= 64 * 1024 * 1024        # v7x: 64 MiB / TC
    vmem_limit = (48 if small_vmem else 96) * 1024 * 1024
    default_td = 256 if small_vmem else 512
    default_ts = 256 if small_vmem else 512
    # bf16 VPU/EUP exists on v6e/v7x; keep elementwise softmax math f32 on v5e
    # (and anything older / unknown-but-v5ish).
    bf16_elem = not any(g in kind for g in ("v2", "v3", "v4", "v5"))
    return vmem_limit, default_td, default_ts, bf16_elem


# --------------------------------------------------------------------------- #
# Pass 1: projection + per-node attention scalars.
#   fs   = feat @ W                (tm, H*D)  bf16 x bf16 MXU, f32 accumulate
#   el^T = wl^T @ feat^T           (H, tm)    wl = fold(W, attn_l), f32
#   er^T = wr^T @ feat^T           (H, tm)
# feat is kept f32 (it is tiny vs the N^2 pass) so the attention logits keep
# full precision; it is cast to bf16 in-register for the projection matmul.
# --------------------------------------------------------------------------- #
def _project_kernel(feat_ref, w_ref, wl_ref, wr_ref, fs_ref, elt_ref, ert_ref):
    feat = feat_ref[...]                                   # (tm, F_in) f32
    fs = jnp.dot(feat.astype(jnp.bfloat16), w_ref[...],
                 preferred_element_type=jnp.float32)       # bf16 MXU
    fs_ref[...] = fs.astype(jnp.bfloat16)                  # narrow inter-pass buf
    # el^T[h, n] = sum_f wl[f, h] * feat[n, f]   (transposed-lhs dot_general)
    elt_ref[...] = jax.lax.dot_general(
        wl_ref[...], feat, (((0,), (1,)), ((), ())),
        preferred_element_type=jnp.float32)
    ert_ref[...] = jax.lax.dot_general(
        wr_ref[...], feat, (((0,), (1,)), ((), ())),
        preferred_element_type=jnp.float32)


# --------------------------------------------------------------------------- #
# Pass 2: online-softmax edge attention + aggregation over (dst tile, src tile).
# Scratch m/l/acc persist across the src ("arbitrary") grid axis.
# --------------------------------------------------------------------------- #
def _attention_kernel(adj_ref, fs_ref, elt_ref, ert_ref, expand_ref, bias_ref,
                      out_ref, m_sc, l_sc, acc_sc, *, num_heads, out_feats,
                      exp_dtype):
    H, D = num_heads, out_feats
    s_idx = pl.program_id(1)

    @pl.when(s_idx == 0)
    def _init():
        m_sc[...] = jnp.full_like(m_sc, INIT_M)
        l_sc[...] = jnp.zeros_like(l_sc)
        acc_sc[...] = jnp.zeros_like(acc_sc)

    edge_mask = adj_ref[...] > 0                           # (td, ts) from int8
    elt = elt_ref[...]                                     # (H, ts)  src scalars
    ert = ert_ref[...]                                     # (H, td)  dst scalars

    # One (H, td, ts) slab for all heads (no per-head elementwise temporaries).
    logits = ert[:, :, None] + elt[:, None, :]             # e[h, v, u]
    logits = jnp.maximum(logits, NEG_SLOPE * logits)       # leaky_relu (slope<1)
    masked = jnp.where(edge_mask[None, :, :], logits, MASK_VAL)

    m_prev = m_sc[...]                                     # (H, td)
    m_new = jnp.maximum(m_prev, jnp.max(masked, axis=-1))  # (H, td)
    alpha = jnp.exp(m_prev - m_new)                        # online-softmax rescale

    shifted = masked - m_new[:, :, None]                   # keep the sub in f32
    p = jnp.exp(shifted.astype(exp_dtype))                 # bf16 EUP on v6e/v7x
    l_sc[...] = alpha * l_sc[...] + jnp.sum(p.astype(jnp.float32), axis=-1)
    m_sc[...] = m_new

    # bf16 x bf16 MXU aggregation with f32 accumulation (fs already bf16).
    p_mm = p.astype(jnp.bfloat16)                          # (H, td, ts)
    fs = fs_ref[...]                                       # (ts, H*D) bf16
    deltas = [jnp.dot(p_mm[h], fs[:, h * D:(h + 1) * D],
                      preferred_element_type=jnp.float32) for h in range(H)]
    delta = jnp.concatenate(deltas, axis=-1)               # (td, H*D) f32

    # Replicate per-head scalars (H, td) -> (td, H*D) with a tiny MXU
    # contraction against the constant 0/1 `expand` matrix (avoids an XLU
    # transpose; MXU slot is idle-ish here since EUP/VPU bind).
    expand = expand_ref[...]                               # (H, H*D)
    alpha_full = jax.lax.dot_general(
        alpha, expand, (((0,), (0,)), ((), ())),
        preferred_element_type=jnp.float32)                # (td, H*D)
    acc_sc[...] = alpha_full * acc_sc[...] + delta

    @pl.when(s_idx == pl.num_programs(1) - 1)
    def _finalize():
        inv = pl.reciprocal(l_sc[...], approx=True)        # (H, td) EUP
        inv_full = jax.lax.dot_general(
            inv, expand, (((0,), (0,)), ((), ())),
            preferred_element_type=jnp.float32)
        # Single lane-dense (td, H*D) store, once per dst tile.
        out_ref[...] = acc_sc[...] * inv_full + bias_ref[...]


def gat_conv_forward(feat, adj, w_all, attn_l, attn_r, bias, *,
                     num_heads, out_feats, block_dst=None, block_src=None):
    """feat (N,F_in), adj (N,N) with adj[dst,src]!=0 <=> edge src->dst,
    w_all (F_in,H*D) = fc.weight^T, attn_l/attn_r (H,D), bias (H*D,)
    -> (N, H, D)."""
    N, F_in = feat.shape
    H, D = num_heads, out_feats
    HD = H * D
    assert w_all.shape == (F_in, HD)
    assert adj.shape == (N, N)

    vmem_limit, default_td, default_ts, bf16_elem = _tpu_config()

    # Pad node count to a multiple of 128 so (8,128)/(32,128) tiling and the
    # software pipeline hold for any N; padded dst rows are sliced off below.
    N_pad = _round_up(N, 128)
    if N_pad != N:
        feat = jnp.pad(feat, ((0, N_pad - N), (0, 0)))
        adj = jnp.pad(adj, ((0, N_pad - N), (0, N_pad - N)))

    feat = feat.astype(jnp.float32)
    w_bf16 = w_all.astype(jnp.bfloat16)
    adj_i8 = (adj != 0).astype(jnp.int8)     # int8 mask: half of bf16 HBM/VMEM

    # Host-side fold of the attention vectors into the projection weights:
    #   el = feat @ (W @ attn_l) ,  er = feat @ (W @ attn_r)
    w3 = w_all.astype(jnp.float32).reshape(F_in, H, D)
    wl = jnp.einsum("fhd,hd->fh", w3, attn_l.astype(jnp.float32))   # (F_in, H)
    wr = jnp.einsum("fhd,hd->fh", w3, attn_r.astype(jnp.float32))   # (F_in, H)
    bias2d = bias.astype(jnp.float32).reshape(1, HD)
    # expand[h, h'*D + d] = 1 if h == h' else 0  (head-scalar replication matrix)
    expand = jnp.repeat(jnp.eye(H, dtype=jnp.float32), D, axis=1)   # (H, HD)

    # ---------------- pass 1: projection ----------------
    tm = _pick_tile(N_pad, 512, 128)
    fs, elt, ert = pl.pallas_call(
        _project_kernel,
        out_shape=(
            jax.ShapeDtypeStruct((N_pad, HD), jnp.bfloat16),   # projected feats
            jax.ShapeDtypeStruct((H, N_pad), jnp.float32),     # el^T
            jax.ShapeDtypeStruct((H, N_pad), jnp.float32),     # er^T
        ),
        grid_spec=pltpu.PrefetchScalarGridSpec(
            num_scalar_prefetch=0,
            grid=(N_pad // tm,),
            in_specs=[
                pl.BlockSpec((tm, F_in), lambda i: (i, 0)),    # feat tile (f32)
                pl.BlockSpec((F_in, HD), lambda i: (0, 0)),    # W (bf16, shared)
                pl.BlockSpec((F_in, H), lambda i: (0, 0)),     # folded attn_l
                pl.BlockSpec((F_in, H), lambda i: (0, 0)),     # folded attn_r
            ],
            out_specs=[
                pl.BlockSpec((tm, HD), lambda i: (i, 0)),
                pl.BlockSpec((H, tm), lambda i: (0, i)),
                pl.BlockSpec((H, tm), lambda i: (0, i)),
            ],
        ),
        compiler_params=pltpu.CompilerParams(
            dimension_semantics=("parallel",),
            vmem_limit_bytes=vmem_limit),
    )(feat, w_bf16, wl, wr)

    # ---------------- pass 2: online-softmax attention + aggregation ---------
    if block_dst is None:
        block_dst = default_td
    if block_src is None:
        block_src = default_ts
    td = _pick_tile(N_pad, block_dst, 128)
    ts = _pick_tile(N_pad, block_src, 128)
    exp_dtype = jnp.bfloat16 if bf16_elem else jnp.float32

    # NOTE: the only grid-invariant pass-2 inputs left are the tiny `expand`
    # (H,HD) and `bias` (1,HD); default double-buffering of those costs a few
    # KiB, so no pipeline_mode override is needed (the big arrays fs/elt are
    # now streamed per src tile and *want* double buffering).
    kernel = functools.partial(_attention_kernel, num_heads=H, out_feats=D,
                               exp_dtype=exp_dtype)
    out_flat = pl.pallas_call(
        kernel,
        out_shape=jax.ShapeDtypeStruct((N_pad, HD), jnp.float32),
        grid_spec=pltpu.PrefetchScalarGridSpec(
            num_scalar_prefetch=0,
            grid=(N_pad // td, N_pad // ts),
            in_specs=[
                pl.BlockSpec((td, ts), lambda d, s: (d, s)),   # adj tile (int8)
                pl.BlockSpec((ts, HD), lambda d, s: (s, 0)),   # fs src tile (bf16)
                pl.BlockSpec((H, ts), lambda d, s: (0, s)),    # el^T src tile
                pl.BlockSpec((H, td), lambda d, s: (0, d)),    # er^T dst tile
                pl.BlockSpec((H, HD), lambda d, s: (0, 0)),    # head-expand const
                pl.BlockSpec((1, HD), lambda d, s: (0, 0)),    # bias
            ],
            out_specs=pl.BlockSpec((td, HD), lambda d, s: (d, 0)),
            scratch_shapes=[
                pltpu.VMEM((H, td), jnp.float32),              # running max
                pltpu.VMEM((H, td), jnp.float32),              # running denom
                pltpu.VMEM((td, HD), jnp.float32),             # output accumulator
            ],
        ),
        compiler_params=pltpu.CompilerParams(
            dimension_semantics=("parallel", "arbitrary"),     # dst || , src reduce
            vmem_limit_bytes=vmem_limit),
    )(adj_i8, fs, elt, ert, expand, bias2d)

    # Drop padded dst rows; trailing-dim reshape is free (no transpose).
    return out_flat[:N].reshape(N, H, D)


# --------------------------------------------------------------------------- #
# Pure-JAX f32 reference with the module's exact semantics.
# --------------------------------------------------------------------------- #
def reference_gat(feat, adj, w_all, attn_l, attn_r, bias, num_heads, out_feats):
    N = feat.shape[0]
    H, D = num_heads, out_feats
    hp = jax.lax.Precision.HIGHEST
    fs = jnp.dot(feat, w_all, precision=hp).reshape(N, H, D)
    el = jnp.sum(fs * attn_l[None], axis=-1)              # (N, H)
    er = jnp.sum(fs * attn_r[None], axis=-1)              # (N, H)
    e = er[:, None, :] + el[None, :, :]                    # (dst, src, H)
    e = jnp.where(e > 0, e, NEG_SLOPE * e)
    adj_f = (adj != 0).astype(jnp.float32)
    masked = jnp.where(adj_f[..., None] > 0, e, -1e30)
    m = jnp.max(masked, axis=1, keepdims=True)
    p = jnp.exp(masked - m) * adj_f[..., None]
    a = p / jnp.sum(p, axis=1, keepdims=True)              # edge softmax
    rst = jnp.einsum("vuh,uhd->vhd", a, fs, precision=hp)
    return rst + bias.reshape(1, H, D)


if __name__ == "__main__":
    # N=200 is deliberately NOT a multiple of 128 (exercises the padding path),
    # and block_dst=block_src=128 gives a 2x2 pass-2 grid (exercises the online
    # softmax across multiple src tiles plus the dst "parallel" axis).
    N, F_in, H, D = 200, 32, 4, 8
    key = jax.random.PRNGKey(0)
    k_feat, k_w, k_al, k_ar, k_b, k_adj = jax.random.split(key, 6)

    feat = jax.random.normal(k_feat, (N, F_in), dtype=jnp.float32)

    gain = jnp.sqrt(2.0)                                   # xavier-normal, relu gain
    w_std = gain * jnp.sqrt(2.0 / (F_in + H * D))
    w_all = w_std * jax.random.normal(k_w, (F_in, H * D), dtype=jnp.float32)
    a_std = gain * jnp.sqrt(2.0 / (D + 1))
    attn_l = a_std * jax.random.normal(k_al, (H, D), dtype=jnp.float32)
    attn_r = a_std * jax.random.normal(k_ar, (H, D), dtype=jnp.float32)
    bias = 0.1 * jax.random.normal(k_b, (H * D,), dtype=jnp.float32)

    # Random directed graph + self loops (every dst has in-degree >= 1, as the
    # module requires unless allow_zero_in_degree=True).
    adj01 = jax.random.bernoulli(k_adj, 0.2, (N, N)).astype(jnp.float32)
    adj01 = jnp.maximum(adj01, jnp.eye(N, dtype=jnp.float32))   # adj[dst, src]

    out = gat_conv_forward(feat, adj01, w_all, attn_l, attn_r, bias,
                           num_heads=H, out_feats=D,
                           block_dst=128, block_src=128)
    out = jax.block_until_ready(out)

    ref = reference_gat(feat, adj01, w_all, attn_l, attn_r, bias, H, D)
    # Tolerance reflects the intended mixed-precision path: bf16 fs storage,
    # bf16 softmax probabilities / bf16 MXU aggregation (and bf16 exp on
    # v6e/v7x), plus the approx EUP reciprocal.  Reference stays f32.
    np.testing.assert_allclose(np.asarray(out), np.asarray(ref),
                               rtol=5e-2, atol=8e-2)

    # TODO(synk): feat_drop/attn_drop, residual fc, edge-feature attention,
    # activation and get_attention are identity/disabled under the module's
    # default eval-mode arguments and are not implemented here.
    print("KERNEL_OK")
</pallas_src>

<mosaic_0001>
module attributes {stable_mosaic.version = 11 : i64} {
  func.func @_project_kernel(%arg0: i32, %arg1: memref<256x32xf32, #tpu.memory_space<vmem>>, %arg2: memref<32x32xbf16, #tpu.memory_space<vmem>>, %arg3: memref<32x4xf32, #tpu.memory_space<vmem>>, %arg4: memref<32x4xf32, #tpu.memory_space<vmem>>, %arg5: memref<256x32xbf16, #tpu.memory_space<vmem>>, %arg6: memref<4x256xf32, #tpu.memory_space<vmem>>, %arg7: memref<4x256xf32, #tpu.memory_space<vmem>>) attributes {dimension_semantics = [#tpu.dimension_semantics<parallel>], iteration_bounds = array<i64: 1>, scalar_prefetch = 0 : i64, scratch_operands = 0 : i64, tpu.core_type = #tpu.core_type<tc>, window_params = [{transform_indices = @transform_0, window_bounds = array<i64: 256, 32>}, {pipeline_mode = #tpu.pipeline_mode<synchronous>, transform_indices = @transform_1, window_bounds = array<i64: 32, 32>}, {pipeline_mode = #tpu.pipeline_mode<synchronous>, transform_indices = @transform_2, window_bounds = array<i64: 32, 4>}, {pipeline_mode = #tpu.pipeline_mode<synchronous>, transform_indices = @transform_3, window_bounds = array<i64: 32, 4>}, {transform_indices = @transform_4, window_bounds = array<i64: 256, 32>}, {transform_indices = @transform_5, window_bounds = array<i64: 4, 256>}, {transform_indices = @transform_6, window_bounds = array<i64: 4, 256>}]} {
    %c0 = arith.constant 0 : index
    %c0_0 = arith.constant 0 : index
    %0 = vector.load %arg1[%c0, %c0_0] : memref<256x32xf32, #tpu.memory_space<vmem>>, vector<256x32xf32>
    %1 = arith.truncf %0 : vector<256x32xf32> to vector<256x32xbf16>
    %c0_1 = arith.constant 0 : index
    %c0_2 = arith.constant 0 : index
    %2 = vector.load %arg2[%c0_1, %c0_2] : memref<32x32xbf16, #tpu.memory_space<vmem>>, vector<32x32xbf16>
    %cst = arith.constant dense<0.000000e+00> : vector<256x32xf32>
    %3 = tpu.matmul %1, %2, %cst {dimension_numbers = #tpu.dot_dimension_numbers<[1], [0], [0], [1], [0, 0, 1, 1], [], []>} : vector<256x32xbf16>, vector<32x32xbf16>, vector<256x32xf32> -> vector<256x32xf32>
    %4 = arith.truncf %3 : vector<256x32xf32> to vector<256x32xbf16>
    %c0_3 = arith.constant 0 : index
    %c0_4 = arith.constant 0 : index
    %5 = vector.load %arg5[%c0_3, %c0_4] : memref<256x32xbf16, #tpu.memory_space<vmem>>, vector<256x32xbf16>
    tpu.vector_store %arg5[%c0_3, %c0_4], %4 {strides = array<i32>} : memref<256x32xbf16, #tpu.memory_space<vmem>>, vector<256x32xbf16>,
    %c0_5 = arith.constant 0 : index
    %c0_6 = arith.constant 0 : index
    %6 = vector.load %arg3[%c0_5, %c0_6] : memref<32x4xf32, #tpu.memory_space<vmem>>, vector<32x4xf32>
    %cst_7 = arith.constant dense<0.000000e+00> : vector<4x256xf32>
    %7 = tpu.matmul %6, %0, %cst_7 {dimension_numbers = #tpu.dot_dimension_numbers<[0], [1], [1], [0], [0, 1, 1, 0], [], []>} : vector<32x4xf32>, vector<256x32xf32>, vector<4x256xf32> -> vector<4x256xf32>
    %c0_8 = arith.constant 0 : index
    %c0_9 = arith.constant 0 : index
    %8 = vector.load %arg6[%c0_8, %c0_9] : memref<4x256xf32, #tpu.memory_space<vmem>>, vector<4x256xf32>
    tpu.vector_store %arg6[%c0_8, %c0_9], %7 {strides = array<i32>} : memref<4x256xf32, #tpu.memory_space<vmem>>, vector<4x256xf32>,
    %c0_10 = arith.constant 0 : index
    %c0_11 = arith.constant 0 : index
    %9 = vector.load %arg4[%c0_10, %c0_11] : memref<32x4xf32, #tpu.memory_space<vmem>>, vector<32x4xf32>
    %cst_12 = arith.constant dense<0.000000e+00> : vector<4x256xf32>
    %10 = tpu.matmul %9, %0, %cst_12 {dimension_numbers = #tpu.dot_dimension_numbers<[0], [1], [1], [0], [0, 1, 1, 0], [], []>} : vector<32x4xf32>, vector<256x32xf32>, vector<4x256xf32> -> vector<4x256xf32>
    %c0_13 = arith.constant 0 : index
    %c0_14 = arith.constant 0 : index
    %11 = vector.load %arg7[%c0_13, %c0_14] : memref<4x256xf32, #tpu.memory_space<vmem>>, vector<4x256xf32>
    tpu.vector_store %arg7[%c0_13, %c0_14], %10 {strides = array<i32>} : memref<4x256xf32, #tpu.memory_space<vmem>>, vector<4x256xf32>,
    return
  }
  func.func @transform_0(%arg0: i32) -> (i32, i32) {
    %c0_i32 = arith.constant 0 : i32
    %c0_i32_0 = arith.constant 0 : i32
    return %arg0, %c0_i32 : i32, i32
  }
  func.func @transform_1(%arg0: i32) -> (i32, i32) {
    %c0_i32 = arith.constant 0 : i32
    %c0_i32_0 = arith.constant 0 : i32
    %c0_i32_1 = arith.constant 0 : i32
    return %c0_i32, %c0_i32_0 : i32, i32
  }
  func.func @transform_2(%arg0: i32) -> (i32, i32) {
    %c0_i32 = arith.constant 0 : i32
    %c0_i32_0 = arith.constant 0 : i32
    %c0_i32_1 = arith.constant 0 : i32
    return %c0_i32, %c0_i32_0 : i32, i32
  }
  func.func @transform_3(%arg0: i32) -> (i32, i32) {
    %c0_i32 = arith.constant 0 : i32
    %c0_i32_0 = arith.constant 0 : i32
    %c0_i32_1 = arith.constant 0 : i32
    return %c0_i32, %c0_i32_0 : i32, i32
  }
  func.func @transform_4(%arg0: i32) -> (i32, i32) {
    %c0_i32 = arith.constant 0 : i32
    %c0_i32_0 = arith.constant 0 : i32
    return %arg0, %c0_i32 : i32, i32
  }
  func.func @transform_5(%arg0: i32) -> (i32, i32) {
    %c0_i32 = arith.constant 0 : i32
    %c0_i32_0 = arith.constant 0 : i32
    return %c0_i32, %arg0 : i32, i32
  }
  func.func @transform_6(%arg0: i32) -> (i32, i32) {
    %c0_i32 = arith.constant 0 : i32
    %c0_i32_0 = arith.constant 0 : i32
    return %c0_i32, %arg0 : i32, i32
  }
}

</mosaic_0001>

<bundles_post_ra>
// kernel: tpu_custom_call.1
= control target key start
LH: loop header
LB: loop body
LE: loop exit
PB: predicated region body
PF: predicated region fallthrough
CT: control target
= control target key end

     0   :  { %12 = vsyncpa [#allocation3], 0  ;;  %vm87_vm0 = vcmask 261120   ;;  %s1596_s0 = inlined_call_operand.vmem [shape: f32[256,32], index: 0, kind: input, shape index: {}]   ;;  %s1597_s1 = inlined_call_operand.vmem [shape: bf16[32,32], index: 1, kind: input, shape index: {}]   ;;  %s1598_s2 = inlined_call_operand.vmem [shape: f32[32,4], index: 2, kind: input, shape index: {}]   ;;  %s1599_s3 = inlined_call_operand.vmem [shape: f32[32,4], index: 3, kind: input, shape index: {}]   ;;  %s1600_s4 = inlined_call_operand.vmem [shape: bf16[256,32], index: 4, kind: output, shape index: {0}]   ;;  %s1601_s5 = inlined_call_operand.hbm [shape: f32[4,256], index: 5, kind: output, shape index: {1}]   ;;  %s1602_s6 = inlined_call_operand.hbm [shape: f32[4,256], index: 6, kind: output, shape index: {2}]  }
   0x1   :  { %v669_v0 = vld [vmem:[%s1599_s3] sm:$0xff]  ;;  %v670_v2 = vld [vmem:[%s1599_s3 + $0x8] sm:$0xff]  ;;  %v671_v8 = vld [vmem:[%s1599_s3 + $0x10] sm:$0xff] }
   0x2   :  { %v458_v1 = vld [vmem:[%s1598_s2] sm:$0xff]  ;;  %673 = vxpose.xlu1.b32.start [1/4] (short) (narrow) %v669_v0, 8  ;;  %v459_v3 = vld [vmem:[%s1598_s2 + $0x8] sm:$0xff]  ;;  %v460_v9 = vld [vmem:[%s1598_s2 + $0x10] sm:$0xff] }
   0x3   :  { %462 = vxpose.xlu0.b32.start [1/4] (short) (narrow) %v458_v1, 8  ;;  %v1089_v4 = vld [vmem:[%s1597_s1 + $0x8] sm:$0xff]   ;;  %v1090_v5 = vld [vmem:[%s1597_s1] sm:$0xff]   ;;  %v1211_v11 = vld [vmem:[%s1596_s0 + $0xf8] sm:$0xff] }
   0x4   :  { %v1193_v6 = vld [vmem:[%s1596_s0] sm:$0xff]  ;;  %v1198_v7 = vld [vmem:[%s1596_s0 + $0x8] sm:$0xff]  ;;  %1050 = vmatprep.subr.bf16.mxu0 %v1089_v4  ;;  %v1216_v12 = vld [vmem:[%s1596_s0 + $0x10] sm:$0xff]  ;;  %982 = vmatprep.subr.msk.mxu1 %vm87_vm0, %v1211_v11 }
   0x5   :  { %v55_v10 = vpack.c.bf16 %v1198_v7, %v1193_v6  ;;  %1051 = vmatpush3.bf16.msra.mxu0 %v1089_v4  ;;  %v1221_v13 = vld [vmem:[%s1596_s0 + $0x18] sm:$0xff]  ;;  %v1234_v15 = vld [vmem:[%s1596_s0 + $0x20] sm:$0xff]  ;;  %v1239_v16 = vld [vmem:[%s1596_s0 + $0x28] sm:$0xff] }
   0x6   :  { %674 = vxpose.xlu1.b32.cont [2/4] (short) (narrow) %v670_v2, 8  ;;  %v1228_v14 = vld [vmem:[%s1596_s0 + $0x78] sm:$0xff]  ;;  %1052 = vmatprep.subr.bf16.mxu0 %v1090_v5  ;;  %v1244_v17 = vld [vmem:[%s1596_s0 + $0xf0] sm:$0xff]  ;;  %v56_v20 = vpack.c.bf16 %v1221_v13, %v1216_v12  ;;  %v57_v21 = vpack.c.bf16 %v1239_v16, %v1234_v15  ;;  %v1268_v23 = vld [vmem:[%s1596_s0 + $0xe8] sm:$0xff] }
   0x7   :  { %463 = vxpose.xlu0.b32.cont [2/4] (short) (narrow) %v459_v3, 8  ;;  %1054 = vmatprep.mubr.msk.bf16.mxu0 %vm87_vm0, %v55_v10  ;;  %v672_v18 = vld [vmem:[%s1599_s3 + $0x18] sm:$0xff]  ;;  %v37_v22 = vld [vmem:[%s1596_s0 + $0x70] sm:$0xff]  ;;  %v36_v26 = vld [vmem:[%s1596_s0 + $0x68] sm:$0xff] }
   0x8   :  { %v461_v19 = vld [vmem:[%s1598_s2 + $0x18] sm:$0xff]  ;;  %983 = vmatpush3.xpose.msk.msra.mxu1 %vm87_vm0, %v1228_v14  ;;  %v1274_v24 = vld [vmem:[%s1596_s0 + $0x30] sm:$0xff] }
   0x9   :  { %1053 = vmatpush3.bf16.msra.mxu0 %v1090_v5  ;;  %984 = vmatprep.subr.msk.mxu1 %vm87_vm0, %v1244_v17  ;;  %v1283_v25 = vld [vmem:[%s1596_s0 + $0x38] sm:$0xff] }
   0xa   :  { %675 = vxpose.xlu1.b32.cont [3/4] (short) (narrow) %v671_v8, 8  ;;  %1016 = vmatprep.subr.msk.mxu0 %vm87_vm0, %v1211_v11 }
   0xb   :  { %464 = vxpose.xlu0.b32.cont [3/4] (short) (narrow) %v460_v9, 8 }
   0xc   :  { %1055 = vmatmul.mubr.msk.bf16.vlgmr.msra.gmra.mxu0 %vm87_vm0, %v56_v20  ;;  %985 = vmatpush3.xpose.msk.msra.mxu1 %vm87_vm0, %v37_v22 }
   0xd   :  { %1017 = vmatpush3.xpose.msk.msra.mxu0 %vm87_vm0, %v1228_v14  ;;  %1058 = vmatprep.mubr.msk.bf16.mxu0 %vm87_vm0, %v57_v21 }
   0xe   :  { %676 = vxpose.xlu1.b32.end [4/4] (short) (narrow) %v672_v18, 8 }
   0xf   :  { %465 = vxpose.xlu0.b32.end [4/4] (short) (narrow) %v461_v19, 8 }
  0x10   :  { %13 = vsyncpa [#allocation5], 0  ;;  %1018 = vmatprep.subr.msk.mxu0 %vm87_vm0, %v1244_v17  ;;  %986 = vmatprep.subr.msk.mxu1 %vm87_vm0, %v1268_v23  ;;  %v31_v27 = vld [vmem:[%s1596_s0 + $0x40] sm:$0xff]  ;;  %v32_v28 = vld [vmem:[%s1596_s0 + $0x48] sm:$0xff]  ;;  %v58_v30 = vpack.c.bf16 %v1283_v25, %v1274_v24  ;;  %v62_v43 = vpack.c.bf16 %v1228_v14, %v37_v22  ;;  %v70_v57 = vpack.c.bf16 %v1211_v11, %v1244_v17  ;;  %vm425_vm1 = vcmask 257024   ;;  %s1135_s9 = smov [#allocation2]  }
  0x11   :  { %v1301_v29 = vld [vmem:[%s1596_s0 + $0xe0] sm:$0xff]  ;;  %987 = vmatpush3.xpose.msk.msra.mxu1 %vm87_vm0, %v36_v26  ;;  %1019 = vmatpush3.xpose.msk.msra.mxu0 %vm87_vm0, %v37_v22  ;;  %v59_v31 = vpack.c.bf16 %v32_v28, %v31_v27  ;;  %v1317_v33 = vld [vmem:[%s1596_s0 + $0xd8] sm:$0xff]  ;;  %v33_v34 = vld [vmem:[%s1596_s0 + $0x50] sm:$0xff]  ;;  %s792_s10 = sshll.u32 %s1135_s9, 4  ;;  %s1136_s11 = smov [#allocation4]   ;;  %s793_s10 = int_to_ptr.vmem [resolvable:$true] %s792_s10 }
  0x12   :  { %988 = vmatprep.subr.msk.mxu1 %vm87_vm0, %v1301_v29  ;;  %v35_v32 = vld [vmem:[%s1596_s0 + $0x60] sm:$0xff]  ;;  %1020 = vmatprep.subr.msk.mxu0 %vm87_vm0, %v1268_v23  ;;  %v34_v35 = vld [vmem:[%s1596_s0 + $0x58] sm:$0xff]  ;;  %v1336_v36 = vld [vmem:[%s1596_s0 + $0xd0] sm:$0xff]  ;;  %v69_v56 = vpack.c.bf16 %v1268_v23, %v1301_v29  ;;  %s802_s2 = sshll.u32 %s1136_s11, 4  ;;  %s1091_s3 = scalar_lea.vmem %s793_s10, 128  ;;  %s803_s2 = int_to_ptr.vmem [resolvable:$true] %s802_s2 }
  0x13   :  { %v60_v37 = vpack.c.bf16 %v34_v35, %v33_v34  ;;  %v61_v38 = vpack.c.bf16 %v36_v26, %v35_v32  ;;  %v48_v39 = vld [vmem:[%s1596_s0 + $0xc8] sm:$0xff]  ;;  %v1357_v40 = vld [vmem:[%s1596_s0 + $0x80] sm:$0xff]  ;;  %v46_v45 = vld [vmem:[%s1596_s0 + $0xb8] sm:$0xff]  ;;  %v68_v55 = vpack.c.bf16 %v1317_v33, %v1336_v36  ;;  %p1092_p0 = scmp.ne.s32.totalorder %s793_s10, %s1091_s3  ;;  %p1096_p1 = scmp.lt.s32.totalorder %s793_s10, %s793_s10 }
  0x14   :  { %1059 = vmatmul.mubr.msk.bf16.gmra.mxu0 %vm87_vm0, %v58_v30  ;;  %v40_v41 = vld [vmem:[%s1596_s0 + $0x88] sm:$0xff]  ;;  %v47_v42 = vld [vmem:[%s1596_s0 + $0xc0] sm:$0xff]  ;;  %v41_v46 = vld [vmem:[%s1596_s0 + $0x90] sm:$0xff]  ;;  %p1097_p2 = scmp.lt.s32.totalorder %s1091_s3, %s1091_s3 }
  0x15   :  { %989 = vmatpush3.xpose.msk.msra.mxu1 %vm87_vm0, %v35_v32  ;;  %1021 = vmatpush3.xpose.msk.msra.mxu0 %vm87_vm0, %v36_v26  ;;  %v63_v44 = vpack.c.bf16 %v40_v41, %v1357_v40  ;;  %v42_v47 = vld [vmem:[%s1596_s0 + $0x98] sm:$0xff]  ;;  %v43_v48 = vld [vmem:[%s1596_s0 + $0xa0] sm:$0xff]  ;;  %v44_v49 = vld [vmem:[%s1596_s0 + $0xa8] sm:$0xff]  ;;  %v67_v54 = vpack.c.bf16 %v48_v39, %v47_v42 }
  0x16   :  { %1062 = vmatprep.mubr.msk.bf16.mxu0 %vm87_vm0, %v59_v31  ;;  %1022 = vmatprep.subr.msk.mxu0 %vm87_vm0, %v1301_v29  ;;  %v64_v50 = vpack.c.bf16 %v42_v47, %v41_v46  ;;  %v45_v51 = vld [vmem:[%s1596_s0 + $0xb0] sm:$0xff]  ;;  %v65_v52 = vpack.c.bf16 %v44_v49, %v43_v48  ;;  %p1098_p3 = por %p1097_p2, %p1096_p1 }
  0x17   :  { %990 = vmatprep.subr.msk.mxu1 %vm87_vm0, %v1317_v33  ;;  %v66_v53 = vpack.c.bf16 %v46_v45, %v45_v51 }
  0x18   :  { %p1099_p4 = pnand %p1098_p3, %p1092_p0 }
  0x19   :  { %991 = vmatpush3.xpose.msk.msra.mxu1 %vm87_vm0, %v34_v35  ;;  %1023 = vmatpush3.xpose.msk.msra.mxu0 %vm87_vm0, %v35_v32 }
  0x1a   :  { %992 = vmatprep.subr.msk.mxu1 %vm87_vm0, %v1336_v36  ;;  %1024 = vmatprep.subr.msk.mxu0 %vm87_vm0, %v1317_v33 }
  0x1c   :  { %1063 = vmatmul.mubr.msk.bf16.gmra.mxu0 %vm87_vm0, %v60_v37 }
  0x1d   :  { %993 = vmatpush3.xpose.msk.msra.mxu1 %vm87_vm0, %v33_v34  ;;  %1025 = vmatpush3.xpose.msk.msra.mxu0 %vm87_vm0, %v34_v35 }
  0x1e   :  { %1066 = vmatprep.mubr.msk.bf16.mxu0 %vm87_vm0, %v61_v38  ;;  %1026 = vmatprep.subr.msk.mxu0 %vm87_vm0, %v1336_v36 }
  0x1f   :  { %994 = vmatprep.subr.msk.mxu1 %vm87_vm0, %v48_v39 }
  0x21   :  { %995 = vmatpush3.xpose.msk.msra.mxu1 %vm87_vm0, %v32_v28  ;;  %1027 = vmatpush3.xpose.msk.msra.mxu0 %vm87_vm0, %v33_v34 }
  0x22   :  { %996 = vmatprep.subr.msk.mxu1 %vm87_vm0, %v47_v42  ;;  %1028 = vmatprep.subr.msk.mxu0 %vm87_vm0, %v48_v39 }
  0x24   :  { %1067 = vmatmul.mubr.msk.bf16.gmra.mxu0 %vm87_vm0, %v62_v43 }
  0x25   :  { %997 = vmatpush3.xpose.msk.msra.mxu1 %vm87_vm0, %v31_v27  ;;  %1029 = vmatpush3.xpose.msk.msra.mxu0 %vm87_vm0, %v32_v28 }
  0x26   :  { %1070 = vmatprep.mubr.msk.bf16.mxu0 %vm87_vm0, %v63_v44  ;;  %1030 = vmatprep.subr.msk.mxu0 %vm87_vm0, %v47_v42 }
  0x27   :  { %998 = vmatprep.subr.msk.mxu1 %vm87_vm0, %v46_v45 }
  0x29   :  { %999 = vmatpush3.xpose.msk.msra.mxu1 %vm87_vm0, %v1283_v25  ;;  %1031 = vmatpush3.xpose.msk.msra.mxu0 %vm87_vm0, %v31_v27 }
  0x2a   :  { %1000 = vmatprep.subr.msk.mxu1 %vm87_vm0, %v45_v51  ;;  %1032 = vmatprep.subr.msk.mxu0 %vm87_vm0, %v46_v45 }
  0x2c   :  { %1071 = vmatmul.mubr.msk.bf16.gmra.mxu0 %vm87_vm0, %v64_v50 }
  0x2d   :  { %1001 = vmatpush3.xpose.msk.msra.mxu1 %vm87_vm0, %v1274_v24  ;;  %1033 = vmatpush3.xpose.msk.msra.mxu0 %vm87_vm0, %v1283_v25 }
  0x2e   :  { %1074 = vmatprep.mubr.msk.bf16.mxu0 %vm87_vm0, %v65_v52  ;;  %1034 = vmatprep.subr.msk.mxu0 %vm87_vm0, %v45_v51 }
  0x2f   :  { %1002 = vmatprep.subr.msk.mxu1 %vm87_vm0, %v44_v49 }
  0x31   :  { %1003 = vmatpush3.xpose.msk.msra.mxu1 %vm87_vm0, %v1239_v16  ;;  %1035 = vmatpush3.xpose.msk.msra.mxu0 %vm87_vm0, %v1274_v24 }
  0x32   :  { %1004 = vmatprep.subr.msk.mxu1 %vm87_vm0, %v43_v48  ;;  %1036 = vmatprep.subr.msk.mxu0 %vm87_vm0, %v44_v49 }
  0x34   :  { %1075 = vmatmul.mubr.msk.bf16.gmra.mxu0 %vm87_vm0, %v66_v53 }
  0x35   :  { %1005 = vmatpush3.xpose.msk.msra.mxu1 %vm87_vm0, %v1234_v15  ;;  %1037 = vmatpush3.xpose.msk.msra.mxu0 %vm87_vm0, %v1239_v16 }
  0x36   :  { %1078 = vmatprep.mubr.msk.bf16.mxu0 %vm87_vm0, %v67_v54  ;;  %1038 = vmatprep.subr.msk.mxu0 %vm87_vm0, %v43_v48 }
  0x37   :  { %1006 = vmatprep.subr.msk.mxu1 %vm87_vm0, %v42_v47 }
  0x39   :  { %1007 = vmatpush3.xpose.msk.msra.mxu1 %vm87_vm0, %v1221_v13  ;;  %1039 = vmatpush3.xpose.msk.msra.mxu0 %vm87_vm0, %v1234_v15 }
  0x3a   :  { %1008 = vmatprep.subr.msk.mxu1 %vm87_vm0, %v41_v46  ;;  %1040 = vmatprep.subr.msk.mxu0 %vm87_vm0, %v42_v47 }
  0x3c   :  { %1079 = vmatmul.mubr.msk.bf16.gmra.mxu0 %vm87_vm0, %v68_v55 }
  0x3d   :  { %1009 = vmatpush3.xpose.msk.msra.mxu1 %vm87_vm0, %v1216_v12  ;;  %1041 = vmatpush3.xpose.msk.msra.mxu0 %vm87_vm0, %v1221_v13 }
  0x3e   :  { %1082 = vmatprep.mubr.msk.bf16.mxu0 %vm87_vm0, %v69_v56  ;;  %1042 = vmatprep.subr.msk.mxu0 %vm87_vm0, %v41_v46 }
  0x3f   :  { %1010 = vmatprep.subr.msk.mxu1 %vm87_vm0, %v40_v41 }
  0x41   :  { %1011 = vmatpush3.xpose.msk.msra.mxu1 %vm87_vm0, %v1198_v7  ;;  %1043 = vmatpush3.xpose.msk.msra.mxu0 %vm87_vm0, %v1216_v12 }
  0x42   :  { %1012 = vmatprep.subr.msk.mxu1 %vm87_vm0, %v1357_v40  ;;  %1044 = vmatprep.subr.msk.mxu0 %vm87_vm0, %v40_v41 }
  0x44   :  { %1083 = vmatmul.mubr.msk.bf16.gmra.mxu0 %vm87_vm0, %v70_v57 }
  0x45   :  { %1013 = vmatpush3.xpose.msk.msra.mxu1 %vm87_vm0, %v1193_v6  ;;  %1045 = vmatpush3.xpose.msk.msra.mxu0 %vm87_vm0, %v1198_v7 }
  0x46   :  { %1046 = vmatprep.subr.msk.mxu0 %vm87_vm0, %v1357_v40 }
  0x49   :  { %1047 = vmatpush3.xpose.msk.msra.mxu0 %vm87_vm0, %v1193_v6 }
  0x7e   :  { %v689_v58 = vpop.trf.xlu1 }
  0x7f   :  { %v478_v59 = vpop.trf.xlu0  ;;  %1048 = vmatprep.mubr.msk.f32.mxu0 %vm87_vm0, %v689_v58 }
  0x80   :  { %1014 = vmatprep.mubr.msk.f32.mxu1 %vm87_vm0, %v478_v59  ;;  %1049 = vmatmul.mubr.msk.f32.vlgmr.msra.gmra.mxu0 %vm87_vm0, %v689_v58 }
  0x81   :  { %1015 = vmatmul.mubr.msk.f32.vlgmr.msra.gmra.mxu1 %vm87_vm0, %v478_v59 }
  0xcc   :  { %v1056_v60 = vpop.f32.mrf.mxu0 }
  0xcd   :  { %v934_v61 = vpack.c.bf16 %v1056_v60, %v1056_v60 }
  0xce   :  { %v170_v62 = vpop.f32.mrf.mxu0 }
  0xcf   :  { %428 = vst.msk [vmem:[%s1600_s4 + $0x8] sm:$0xf] %vm425_vm1, %v934_v61  ;;  %v932_v63 = vpack.c.bf16 %v170_v62, %v170_v62 }
  0xd0   :  { %v1057_v0 = vpop.f32.mrf.mxu0 }
  0xd1   :  { %426 = vst.msk [vmem:[%s1600_s4] sm:$0xf] %vm425_vm1, %v932_v63  ;;  %v935_v1 = vpack.c.bf16 %v1057_v0, %v1057_v0 }
  0xd2   :  { %v173_v2 = vpop.f32.mrf.mxu0 }
  0xd3   :  { %429 = vst.msk [vmem:[%s1600_s4 + $0xc] sm:$0xf] %vm425_vm1, %v935_v1  ;;  %v933_v3 = vpack.c.bf16 %v173_v2, %v173_v2 }
  0xd4   :  { %v1060_v4 = vpop.f32.mrf.mxu0 }
  0xd5   :  { %427 = vst.msk [vmem:[%s1600_s4 + $0x4] sm:$0xf] %vm425_vm1, %v933_v3  ;;  %v938_v5 = vpack.c.bf16 %v1060_v4, %v1060_v4 }
  0xd6   :  { %v186_v6 = vpop.f32.mrf.mxu0 }
  0xd7   :  { %432 = vst.msk [vmem:[%s1600_s4 + $0x18] sm:$0xf] %vm425_vm1, %v938_v5  ;;  %v936_v7 = vpack.c.bf16 %v186_v6, %v186_v6 }
  0xd8   :  { %v1061_v8 = vpop.f32.mrf.mxu0 }
  0xd9   :  { %430 = vst.msk [vmem:[%s1600_s4 + $0x10] sm:$0xf] %vm425_vm1, %v936_v7  ;;  %v939_v9 = vpack.c.bf16 %v1061_v8, %v1061_v8 }
  0xda   :  { %v189_v10 = vpop.f32.mrf.mxu0 }
  0xdb   :  { %433 = vst.msk [vmem:[%s1600_s4 + $0x1c] sm:$0xf] %vm425_vm1, %v939_v9  ;;  %v937_v11 = vpack.c.bf16 %v189_v10, %v189_v10 }
  0xdc   :  { %v1064_v12 = vpop.f32.mrf.mxu0 }
  0xdd   :  { %431 = vst.msk [vmem:[%s1600_s4 + $0x14] sm:$0xf] %vm425_vm1, %v937_v11  ;;  %v942_v13 = vpack.c.bf16 %v1064_v12, %v1064_v12 }
  0xde   :  { %v202_v14 = vpop.f32.mrf.mxu0 }
  0xdf   :  { %436 = vst.msk [vmem:[%s1600_s4 + $0x28] sm:$0xf] %vm425_vm1, %v942_v13  ;;  %v940_v15 = vpack.c.bf16 %v202_v14, %v202_v14 }
  0xe0   :  { %v1065_v16 = vpop.f32.mrf.mxu0 }
  0xe1   :  { %434 = vst.msk [vmem:[%s1600_s4 + $0x20] sm:$0xf] %vm425_vm1, %v940_v15  ;;  %v943_v17 = vpack.c.bf16 %v1065_v16, %v1065_v16 }
  0xe2   :  { %v205_v18 = vpop.f32.mrf.mxu0 }
  0xe3   :  { %437 = vst.msk [vmem:[%s1600_s4 + $0x2c] sm:$0xf] %vm425_vm1, %v943_v17  ;;  %v941_v19 = vpack.c.bf16 %v205_v18, %v205_v18 }
  0xe4   :  { %v1068_v20 = vpop.f32.mrf.mxu0 }
  0xe5   :  { %435 = vst.msk [vmem:[%s1600_s4 + $0x24] sm:$0xf] %vm425_vm1, %v941_v19  ;;  %v946_v21 = vpack.c.bf16 %v1068_v20, %v1068_v20 }
  0xe6   :  { %v218_v22 = vpop.f32.mrf.mxu0 }
  0xe7   :  { %440 = vst.msk [vmem:[%s1600_s4 + $0x38] sm:$0xf] %vm425_vm1, %v946_v21  ;;  %v944_v23 = vpack.c.bf16 %v218_v22, %v218_v22 }
  0xe8   :  { %v1069_v24 = vpop.f32.mrf.mxu0 }
  0xe9   :  { %438 = vst.msk [vmem:[%s1600_s4 + $0x30] sm:$0xf] %vm425_vm1, %v944_v23  ;;  %v947_v25 = vpack.c.bf16 %v1069_v24, %v1069_v24 }
  0xea   :  { %v221_v26 = vpop.f32.mrf.mxu0 }
  0xeb   :  { %441 = vst.msk [vmem:[%s1600_s4 + $0x3c] sm:$0xf] %vm425_vm1, %v947_v25  ;;  %v945_v27 = vpack.c.bf16 %v221_v26, %v221_v26 }
  0xec   :  { %v1072_v28 = vpop.f32.mrf.mxu0 }
  0xed   :  { %439 = vst.msk [vmem:[%s1600_s4 + $0x34] sm:$0xf] %vm425_vm1, %v945_v27  ;;  %v950_v29 = vpack.c.bf16 %v1072_v28, %v1072_v28 }
  0xee   :  { %v234_v30 = vpop.f32.mrf.mxu0 }
  0xef   :  { %444 = vst.msk [vmem:[%s1600_s4 + $0x48] sm:$0xf] %vm425_vm1, %v950_v29  ;;  %v948_v31 = vpack.c.bf16 %v234_v30, %v234_v30 }
  0xf0   :  { %v1073_v32 = vpop.f32.mrf.mxu0 }
  0xf1   :  { %442 = vst.msk [vmem:[%s1600_s4 + $0x40] sm:$0xf] %vm425_vm1, %v948_v31  ;;  %v951_v33 = vpack.c.bf16 %v1073_v32, %v1073_v32 }
  0xf2   :  { %v237_v34 = vpop.f32.mrf.mxu0 }
  0xf3   :  { %445 = vst.msk [vmem:[%s1600_s4 + $0x4c] sm:$0xf] %vm425_vm1, %v951_v33  ;;  %v949_v35 = vpack.c.bf16 %v237_v34, %v237_v34 }
  0xf4   :  { %v1076_v36 = vpop.f32.mrf.mxu0 }
  0xf5   :  { %443 = vst.msk [vmem:[%s1600_s4 + $0x44] sm:$0xf] %vm425_vm1, %v949_v35  ;;  %v954_v37 = vpack.c.bf16 %v1076_v36, %v1076_v36 }
  0xf6   :  { %v250_v38 = vpop.f32.mrf.mxu0 }
  0xf7   :  { %448 = vst.msk [vmem:[%s1600_s4 + $0x58] sm:$0xf] %vm425_vm1, %v954_v37  ;;  %v952_v39 = vpack.c.bf16 %v250_v38, %v250_v38 }
  0xf8   :  { %v1077_v40 = vpop.f32.mrf.mxu0 }
  0xf9   :  { %446 = vst.msk [vmem:[%s1600_s4 + $0x50] sm:$0xf] %vm425_vm1, %v952_v39  ;;  %v955_v41 = vpack.c.bf16 %v1077_v40, %v1077_v40 }
  0xfa   :  { %v253_v42 = vpop.f32.mrf.mxu0 }
  0xfb   :  { %449 = vst.msk [vmem:[%s1600_s4 + $0x5c] sm:$0xf] %vm425_vm1, %v955_v41  ;;  %v953_v43 = vpack.c.bf16 %v253_v42, %v253_v42 }
  0xfc   :  { %v1080_v44 = vpop.f32.mrf.mxu0 }
  0xfd   :  { %447 = vst.msk [vmem:[%s1600_s4 + $0x54] sm:$0xf] %vm425_vm1, %v953_v43  ;;  %v958_v45 = vpack.c.bf16 %v1080_v44, %v1080_v44 }
  0xfe   :  { %v266_v46 = vpop.f32.mrf.mxu0 }
  0xff   :  { %452 = vst.msk [vmem:[%s1600_s4 + $0x68] sm:$0xf] %vm425_vm1, %v958_v45  ;;  %v956_v47 = vpack.c.bf16 %v266_v46, %v266_v46 }
 0x100   :  { %v1081_v48 = vpop.f32.mrf.mxu0 }
 0x101   :  { %450 = vst.msk [vmem:[%s1600_s4 + $0x60] sm:$0xf] %vm425_vm1, %v956_v47  ;;  %v959_v49 = vpack.c.bf16 %v1081_v48, %v1081_v48 }
 0x102   :  { %v269_v50 = vpop.f32.mrf.mxu0 }
 0x103   :  { %453 = vst.msk [vmem:[%s1600_s4 + $0x6c] sm:$0xf] %vm425_vm1, %v959_v49  ;;  %v957_v51 = vpack.c.bf16 %v269_v50, %v269_v50 }
 0x104   :  { %v1084_v52 = vpop.f32.mrf.mxu0 }
 0x105   :  { %451 = vst.msk [vmem:[%s1600_s4 + $0x64] sm:$0xf] %vm425_vm1, %v957_v51  ;;  %v962_v53 = vpack.c.bf16 %v1084_v52, %v1084_v52 }
 0x106   :  { %v282_v54 = vpop.f32.mrf.mxu0 }
 0x107   :  { %456 = vst.msk [vmem:[%s1600_s4 + $0x78] sm:$0xf] %vm425_vm1, %v962_v53  ;;  %v960_v55 = vpack.c.bf16 %v282_v54, %v282_v54 }
 0x108   :  { %v1085_v56 = vpop.f32.mrf.mxu0 }
 0x109   :  { %454 = vst.msk [vmem:[%s1600_s4 + $0x70] sm:$0xf] %vm425_vm1, %v960_v55  ;;  %v963_v57 = vpack.c.bf16 %v1085_v56, %v1085_v56 }
 0x10a   :  { %v285_v58 = vpop.f32.mrf.mxu0 }
 0x10b   :  { %457 = vst.msk [vmem:[%s1600_s4 + $0x7c] sm:$0xf] %vm425_vm1, %v963_v57  ;;  %v961_v59 = vpack.c.bf16 %v285_v58, %v285_v58 }
 0x10d   :  { %455 = vst.msk [vmem:[%s1600_s4 + $0x74] sm:$0xf] %vm425_vm1, %v961_v59 }
 0x140   :  { %v774_v61 = vpop.f32.mrf.mxu0 }
 0x141   :  { %v659_v60 = vpop.f32.mrf.mxu1 }
 0x142   :  { %v776_v63 = vpop.f32.mrf.mxu0 }
 0x143   :  { %v661_v62 = vpop.f32.mrf.mxu1  ;;  %v781_v1 = vcombine.low %v774_v61, %v776_v63 }
 0x144   :  { %v666_v0 = vcombine.low %v659_v60, %v661_v62 }
 0x145   :  { %783 = vst [vmem:[#allocation4] sm:$0xff] %v781_v1 }
 0x146   :  { %668 = vst [vmem:[#allocation2] sm:$0xff] %v666_v0 }
 0x147   :  { %1102 = shalt.err (!%p1099_p4)
}
 0x148   :  { %795 = dma.vmem_to_hbm [thread:$0]  %s793_s10, 128, %s1601_s5, [#allocation3]  }
 0x149   :  { %s1111_s13 = scalar_lea.vmem %s803_s2, 128  ;;  %p1116_p6 = scmp.lt.s32.totalorder %s803_s2, %s803_s2 }
 0x14a   :  { %p1112_p5 = scmp.ne.s32.totalorder %s803_s2, %s1111_s13  ;;  %p1117_p7 = scmp.lt.s32.totalorder %s1111_s13, %s1111_s13 }
 0x14c   :  { %p1118_p8 = por %p1117_p7, %p1116_p6 }
 0x14e   :  { %p1119_p9 = pnand %p1118_p8, %p1112_p5 }
 0x150   :  { %1122 = shalt.err (!%p1119_p9)
}
 0x151   :  { %805 = dma.vmem_to_hbm [thread:$0]  %s803_s2, 128, %s1602_s6, [#allocation5]  }
 0x152   :  { %1131 = dma.done.wait [#allocation3], 128  }
 0x153   :  { %1132 = vsyncadd [#allocation3], 4294967168 }
 0x154   :  { %1133 = dma.done.wait [#allocation5], 128  }
 0x155   :  { %1134 = vsyncadd [#allocation5], 4294967168 }
 0x156   :  { %814 = vsyncpa [#allocation3], 1 }
 0x157   :  { %815 = vsyncpa [#allocation5], 1 }

</bundles_post_ra>
